<compile_context>
chip_gen: v5e
topology: v5e:2x2
jax: 0.10.0
libtpu: 0.0.40
codegen_flags: <defaults>
</compile_context>

<pallas_src>
import jax
import jax.numpy as jnp
from jax.experimental import pallas as pl
from jax.experimental.pallas import tpu as pltpu

# Layer dims of the PyTorch module, weights stored pre-transposed as (in, out).
DIMS = [(5, 10), (10, 15), (15, 30), (30, 5)]
N_LAYERS = len(DIMS)
FPAD = 128                       # lane-padded feature width
ROWS_PER_LAYER = FPAD + 8        # 128 padded weight rows + 8 rows (bias in row 128)
SLAB_ROWS = N_LAYERS * ROWS_PER_LAYER  # 544, multiple of 8


def fused_mlp_kernel(x_ref, p_ref, o_ref):
    """relu(relu(relu(x@W1+b1)@W2+b2)@W3+b3)@W4+b4 on 128-lane padded tiles."""
    h = x_ref[...]                              # (TB, 128) f32, already lane-padded
    for layer in range(N_LAYERS):
        base = layer * ROWS_PER_LAYER           # static -> free slices
        w = p_ref[base:base + FPAD, :]          # (128, 128) zero-padded weight
        b = p_ref[base + FPAD:base + FPAD + 1, :]   # (1, 128) zero-padded bias
        h = jnp.dot(h, w, preferred_element_type=jnp.float32) + b
        if layer < N_LAYERS - 1:
            h = jnp.maximum(h, 0.0)
    o_ref[...] = h.astype(o_ref.dtype)          # lane-dense (TB, 128) store


def simple_model_uneven_forward(x, packed_params, *, tb=512):
    """x: (B, 5) float32.  packed_params: (544, 128) f32 slab from pack_params."""
    B, f_in = x.shape
    # Batch tile: multiple of 8 sublanes, no larger than the (rounded-up) batch.
    tb_eff = min(tb, ((B + 7) // 8) * 8)
    tb_eff = max(8, ((tb_eff + 7) // 8) * 8)
    n_tiles = pl.cdiv(B, tb_eff)
    b_pad = n_tiles * tb_eff

    # Zero-pad once on the host: (B,5) -> (B_pad, 128). Padded rows/cols are 0,
    # matching the zero-padded weight rows/cols, so no garbage leaks forward.
    x_pad = jnp.zeros((b_pad, FPAD), jnp.float32).at[:B, :f_in].set(
        x.astype(jnp.float32))

    out_pad = pl.pallas_call(
        fused_mlp_kernel,
        out_shape=jax.ShapeDtypeStruct((b_pad, FPAD), jnp.float32),
        grid=(n_tiles,),
        in_specs=[
            pl.BlockSpec((tb_eff, FPAD), lambda i: (i, 0)),       # activations
            pl.BlockSpec((SLAB_ROWS, FPAD), lambda i: (0, 0)),    # resident params
        ],
        out_specs=pl.BlockSpec((tb_eff, FPAD), lambda i: (i, 0)),
        compiler_params=pltpu.CompilerParams(
            dimension_semantics=("parallel",)),   # 2x on v7x (2 TCs); no-op on v5e/v6e
    )(x_pad, packed_params)

    # Slice the real result back out in the wrapper (keeps the kernel store lane-dense).
    return out_pad[:B, :DIMS[-1][1]]


def init_params(key):
    """Deterministic init mimicking nn.Linear's U(-1/sqrt(fan_in), 1/sqrt(fan_in))."""
    params = {}
    for idx, (fan_in, fan_out) in enumerate(DIMS, start=1):
        key, kw, kb = jax.random.split(key, 3)
        bound = 1.0 / jnp.sqrt(jnp.float32(fan_in))
        params[f"w{idx}"] = jax.random.uniform(
            kw, (fan_in, fan_out), jnp.float32, -bound, bound)
        params[f"b{idx}"] = jax.random.uniform(
            kb, (1, fan_out), jnp.float32, -bound, bound)
    return params


def pack_params(params):
    """Pack all weights/biases into one zero-padded (544, 128) f32 slab.

    Layer l occupies rows [l*136, (l+1)*136): rows 0..127 hold the (in,out)
    weight zero-padded to (128,128); row 128 holds the bias zero-padded to 128
    lanes; rows 129..135 are zero padding for sublane alignment.
    """
    slab = jnp.zeros((SLAB_ROWS, FPAD), jnp.float32)
    for layer, (fan_in, fan_out) in enumerate(DIMS):
        base = layer * ROWS_PER_LAYER
        slab = slab.at[base:base + fan_in, :fan_out].set(params[f"w{layer + 1}"])
        slab = slab.at[base + FPAD, :fan_out].set(
            params[f"b{layer + 1}"].reshape(fan_out))
    return slab


def reference_forward(x, params):
    """Pure-JAX reference for correctness checking."""
    h = jnp.maximum(x @ params["w1"] + params["b1"], 0.0)
    h = jnp.maximum(h @ params["w2"] + params["b2"], 0.0)
    h = jnp.maximum(h @ params["w3"] + params["b3"], 0.0)
    return h @ params["w4"] + params["b4"]


if __name__ == "__main__":
    key = jax.random.PRNGKey(0)
    key, kx = jax.random.split(key)
    params = init_params(key)
    packed = pack_params(params)

    # Matches module.get_input(): torch.rand(4, 5) -> uniform [0, 1), shape (4, 5)
    x = jax.random.uniform(kx, (4, 5), jnp.float32)

    out = simple_model_uneven_forward(x, packed)
    out = jax.block_until_ready(out)

    ref = reference_forward(x, params)
    assert out.shape == (4, 5), out.shape
    assert jnp.allclose(out, ref, atol=1e-5, rtol=1e-5), "mismatch vs reference"

    print("KERNEL_OK")
</pallas_src>

<mosaic_0001>
module attributes {stable_mosaic.version = 11 : i64} {
  func.func @fused_mlp_kernel(%arg0: i32, %arg1: memref<8x128xf32, #tpu.memory_space<vmem>>, %arg2: memref<544x128xf32, #tpu.memory_space<vmem>>, %arg3: memref<8x128xf32, #tpu.memory_space<vmem>>) attributes {dimension_semantics = [#tpu.dimension_semantics<parallel>], iteration_bounds = array<i64: 1>, scalar_prefetch = 0 : i64, scratch_operands = 0 : i64, tpu.core_type = #tpu.core_type<tc>, window_params = [{transform_indices = @transform_0, window_bounds = array<i64: 8, 128>}, {pipeline_mode = #tpu.pipeline_mode<synchronous>, transform_indices = @transform_1, window_bounds = array<i64: 544, 128>}, {transform_indices = @transform_2, window_bounds = array<i64: 8, 128>}]} {
    %c0 = arith.constant 0 : index
    %c0_0 = arith.constant 0 : index
    %0 = vector.load %arg1[%c0, %c0_0] : memref<8x128xf32, #tpu.memory_space<vmem>>, vector<8x128xf32>
    %c0_1 = arith.constant 0 : index
    %c0_2 = arith.constant 0 : index
    %1 = vector.load %arg2[%c0_1, %c0_2] : memref<544x128xf32, #tpu.memory_space<vmem>>, vector<128x128xf32>
    %c128 = arith.constant 128 : index
    %c0_3 = arith.constant 0 : index
    %2 = vector.load %arg2[%c128, %c0_3] : memref<544x128xf32, #tpu.memory_space<vmem>>, vector<1x128xf32>
    %cst = arith.constant dense<0.000000e+00> : vector<8x128xf32>
    %3 = tpu.matmul %0, %1, %cst {dimension_numbers = #tpu.dot_dimension_numbers<[1], [0], [0], [1], [0, 0, 1, 1], [], []>} : vector<8x128xf32>, vector<128x128xf32>, vector<8x128xf32> -> vector<8x128xf32>
    %4 = vector.broadcast %2 : vector<1x128xf32> to vector<8x128xf32>
    %5 = arith.addf %3, %4 : vector<8x128xf32>
    %cst_4 = arith.constant 0.000000e+00 : f32
    %6 = vector.broadcast %cst_4 : f32 to vector<8x128xf32>
    %7 = arith.maximumf %5, %6 : vector<8x128xf32>
    %c136 = arith.constant 136 : index
    %c0_5 = arith.constant 0 : index
    %8 = vector.load %arg2[%c136, %c0_5] : memref<544x128xf32, #tpu.memory_space<vmem>>, vector<128x128xf32>
    %c264 = arith.constant 264 : index
    %c0_6 = arith.constant 0 : index
    %9 = vector.load %arg2[%c264, %c0_6] : memref<544x128xf32, #tpu.memory_space<vmem>>, vector<1x128xf32>
    %cst_7 = arith.constant dense<0.000000e+00> : vector<8x128xf32>
    %10 = tpu.matmul %7, %8, %cst_7 {dimension_numbers = #tpu.dot_dimension_numbers<[1], [0], [0], [1], [0, 0, 1, 1], [], []>} : vector<8x128xf32>, vector<128x128xf32>, vector<8x128xf32> -> vector<8x128xf32>
    %11 = vector.broadcast %9 : vector<1x128xf32> to vector<8x128xf32>
    %12 = arith.addf %10, %11 : vector<8x128xf32>
    %cst_8 = arith.constant 0.000000e+00 : f32
    %13 = vector.broadcast %cst_8 : f32 to vector<8x128xf32>
    %14 = arith.maximumf %12, %13 : vector<8x128xf32>
    %c272 = arith.constant 272 : index
    %c0_9 = arith.constant 0 : index
    %15 = vector.load %arg2[%c272, %c0_9] : memref<544x128xf32, #tpu.memory_space<vmem>>, vector<128x128xf32>
    %c400 = arith.constant 400 : index
    %c0_10 = arith.constant 0 : index
    %16 = vector.load %arg2[%c400, %c0_10] : memref<544x128xf32, #tpu.memory_space<vmem>>, vector<1x128xf32>
    %cst_11 = arith.constant dense<0.000000e+00> : vector<8x128xf32>
    %17 = tpu.matmul %14, %15, %cst_11 {dimension_numbers = #tpu.dot_dimension_numbers<[1], [0], [0], [1], [0, 0, 1, 1], [], []>} : vector<8x128xf32>, vector<128x128xf32>, vector<8x128xf32> -> vector<8x128xf32>
    %18 = vector.broadcast %16 : vector<1x128xf32> to vector<8x128xf32>
    %19 = arith.addf %17, %18 : vector<8x128xf32>
    %cst_12 = arith.constant 0.000000e+00 : f32
    %20 = vector.broadcast %cst_12 : f32 to vector<8x128xf32>
    %21 = arith.maximumf %19, %20 : vector<8x128xf32>
    %c408 = arith.constant 408 : index
    %c0_13 = arith.constant 0 : index
    %22 = vector.load %arg2[%c408, %c0_13] : memref<544x128xf32, #tpu.memory_space<vmem>>, vector<128x128xf32>
    %c536 = arith.constant 536 : index
    %c0_14 = arith.constant 0 : index
    %23 = vector.load %arg2[%c536, %c0_14] : memref<544x128xf32, #tpu.memory_space<vmem>>, vector<1x128xf32>
    %cst_15 = arith.constant dense<0.000000e+00> : vector<8x128xf32>
    %24 = tpu.matmul %21, %22, %cst_15 {dimension_numbers = #tpu.dot_dimension_numbers<[1], [0], [0], [1], [0, 0, 1, 1], [], []>} : vector<8x128xf32>, vector<128x128xf32>, vector<8x128xf32> -> vector<8x128xf32>
    %25 = vector.broadcast %23 : vector<1x128xf32> to vector<8x128xf32>
    %26 = arith.addf %24, %25 : vector<8x128xf32>
    %c0_16 = arith.constant 0 : index
    %c0_17 = arith.constant 0 : index
    %27 = vector.load %arg3[%c0_16, %c0_17] : memref<8x128xf32, #tpu.memory_space<vmem>>, vector<8x128xf32>
    tpu.vector_store %arg3[%c0_16, %c0_17], %26 {strides = array<i32>} : memref<8x128xf32, #tpu.memory_space<vmem>>, vector<8x128xf32>,
    return
  }
  func.func @transform_0(%arg0: i32) -> (i32, i32) {
    %c0_i32 = arith.constant 0 : i32
    %c0_i32_0 = arith.constant 0 : i32
    return %arg0, %c0_i32 : i32, i32
  }
  func.func @transform_1(%arg0: i32) -> (i32, i32) {
    %c0_i32 = arith.constant 0 : i32
    %c0_i32_0 = arith.constant 0 : i32
    %c0_i32_1 = arith.constant 0 : i32
    return %c0_i32, %c0_i32_0 : i32, i32
  }
  func.func @transform_2(%arg0: i32) -> (i32, i32) {
    %c0_i32 = arith.constant 0 : i32
    %c0_i32_0 = arith.constant 0 : i32
    return %arg0, %c0_i32 : i32, i32
  }
}

</mosaic_0001>

<bundles_post_ra>
// kernel: tpu_custom_call.1
= control target key start
LH: loop header
LB: loop body
LE: loop exit
PB: predicated region body
PF: predicated region fallthrough
CT: control target
= control target key end

     0   :  { %7 = vsyncpa [#allocation3], 0  ;;  %s333_s0 = inlined_call_operand.hbm [shape: f32[8,128], index: 0, kind: input, shape index: {}]   ;;  %s334_s1 = inlined_call_operand.hbm [shape: f32[544,128], index: 1, kind: input, shape index: {}]   ;;  %s335_s2 = inlined_call_operand.hbm [shape: f32[8,128], index: 2, kind: output, shape index: {}]  }
   0x1   :  { %8 = vsyncpa [#allocation6], 0 }
   0x2   :  { %9 = vsyncpa [#allocation4], 0  ;;  %s15_s11 = sshll.u32 %s333_s0, 4  ;;  %s304_s12 = smov [#allocation2]   ;;  %s16_s11 = int_to_ptr.hbm [resolvable:$true] %s15_s11 }
   0x3   :  { %s17_s13 = sshll.u32 %s304_s12, 4  ;;  %s25_s16 = sshll.u32 %s334_s1, 4  ;;  %s18_s13 = int_to_ptr.vmem [resolvable:$true] %s17_s13  ;;  %s26_s16 = int_to_ptr.hbm [resolvable:$true] %s25_s16 }
   0x4   :  { %20 = dma.hbm_to_vmem [thread:$0]  %s16_s11, 128, %s18_s13, [#allocation3]  }
   0x5   :  { %s305_s17 = smov [#allocation5]   ;;  %s306_s19 = smov 128  }
   0x6   :  { %s27_s18 = sshll.u32 %s305_s17, 4  ;;  %s307_s20 = smov 8   ;;  %s28_s18 = int_to_ptr.vmem [resolvable:$true] %s27_s18 }
   0x7   :  { %33 = dma.hbm_to_vmem [thread:$0]  %s26_s16, 8704, %s28_s18, [#allocation6], %s306_s19, %s306_s19, %s307_s20  }
   0x8   :  { %298 = dma.done.wait [#allocation3], 128  }
   0x9   :  { %299 = vsyncadd [#allocation3], 4294967168 }
   0xa   :  { %300 = dma.done.wait [#allocation6], 8704  }
   0xb   :  { %301 = vsyncadd [#allocation6], 4294958592  ;;  %v58_v0 = vld [vmem:[#allocation5 + $0x78] sm:$0xff]  ;;  %v57_v1 = vld [vmem:[#allocation5 + $0x70] sm:$0xff]  ;;  %s308_s0 = smov [#allocation7]   ;;  %s206_s23 = sshll.u32 %s335_s2, 4  ;;  %s207_s23 = int_to_ptr.hbm [resolvable:$true] %s206_s23 }
   0xc   :  { %61 = vmatpush.msra.mxu0 %v58_v0  ;;  %v56_v2 = vld [vmem:[#allocation5 + $0x68] sm:$0xff]  ;;  %v55_v3 = vld [vmem:[#allocation5 + $0x60] sm:$0xff]  ;;  %v54_v5 = vld [vmem:[#allocation5 + $0x58] sm:$0xff]  ;;  %s204_s1 = sshll.u32 %s308_s0, 4  ;;  %s205_s1 = int_to_ptr.vmem [resolvable:$true] %s204_s1 }
   0xd   :  { %v97_v4 = vld [vmem:[#allocation5 + $0x100] sm:$0xff]  ;;  %v96_v6 = vld [vmem:[#allocation5 + $0xf8] sm:$0xff]  ;;  %v95_v7 = vld [vmem:[#allocation5 + $0xf0] sm:$0xff] }
   0xe   :  { %62 = vmatpush.msra.mxu0 %v57_v1  ;;  %100 = vmatpush.msra.mxu1 %v97_v4  ;;  %v53_v8 = vld [vmem:[#allocation5 + $0x50] sm:$0xff]  ;;  %v94_v9 = vld [vmem:[#allocation5 + $0xe8] sm:$0xff]  ;;  %v93_v11 = vld [vmem:[#allocation5 + $0xe0] sm:$0xff] }
   0xf   :  { %v52_v10 = vld [vmem:[#allocation5 + $0x48] sm:$0xff]  ;;  %v51_v12 = vld [vmem:[#allocation5 + $0x40] sm:$0xff]  ;;  %v92_v13 = vld [vmem:[#allocation5 + $0xd8] sm:$0xff] }
  0x10   :  { %63 = vmatpush.msra.mxu0 %v56_v2  ;;  %101 = vmatpush.msra.mxu1 %v96_v6  ;;  %v50_v14 = vld [vmem:[#allocation5 + $0x38] sm:$0xff]  ;;  %v91_v15 = vld [vmem:[#allocation5 + $0xd0] sm:$0xff]  ;;  %v90_v17 = vld [vmem:[#allocation5 + $0xc8] sm:$0xff] }
  0x11   :  { %v49_v16 = vld [vmem:[#allocation5 + $0x30] sm:$0xff]  ;;  %v48_v18 = vld [vmem:[#allocation5 + $0x28] sm:$0xff]  ;;  %v89_v19 = vld [vmem:[#allocation5 + $0xc0] sm:$0xff] }
  0x12   :  { %64 = vmatpush.msra.mxu0 %v55_v3  ;;  %102 = vmatpush.msra.mxu1 %v95_v7  ;;  %v47_v20 = vld [vmem:[#allocation5 + $0x20] sm:$0xff]  ;;  %v88_v21 = vld [vmem:[#allocation5 + $0xb8] sm:$0xff]  ;;  %v87_v23 = vld [vmem:[#allocation5 + $0xb0] sm:$0xff] }
  0x13   :  { %v46_v22 = vld [vmem:[#allocation5 + $0x18] sm:$0xff]  ;;  %v45_v24 = vld [vmem:[#allocation5 + $0x10] sm:$0xff]  ;;  %v86_v25 = vld [vmem:[#allocation5 + $0xa8] sm:$0xff] }
  0x14   :  { %65 = vmatpush.msra.mxu0 %v54_v5  ;;  %103 = vmatpush.msra.mxu1 %v94_v9  ;;  %v44_v26 = vld [vmem:[#allocation5 + $0x8] sm:$0xff]  ;;  %v85_v27 = vld [vmem:[#allocation5 + $0xa0] sm:$0xff]  ;;  %v42_v29 = vld [vmem:[#allocation2] sm:$0xff] }
  0x15   :  { %v43_v28 = vld [vmem:[#allocation5] sm:$0xff]  ;;  %v84_v30 = vld [vmem:[#allocation5 + $0x98] sm:$0xff]  ;;  %v83_v31 = vld [vmem:[#allocation5 + $0x90] sm:$0xff] }
  0x16   :  { %66 = vmatpush.msra.mxu0 %v53_v8  ;;  %104 = vmatpush.msra.mxu1 %v93_v11  ;;  %v82_v32 = vld [vmem:[#allocation5 + $0x88] sm:$0xff]  ;;  %v135_v34 = vld [vmem:[#allocation5 + $0x180] sm:$0xff]  ;;  %v134_v35 = vld [vmem:[#allocation5 + $0x178] sm:$0xff] }
  0x17   :  { %v136_v33 = vld [vmem:[#allocation5 + $0x188] sm:$0xff]  ;;  %v133_v36 = vld [vmem:[#allocation5 + $0x170] sm:$0xff]  ;;  %v131_v38 = vld [vmem:[#allocation5 + $0x160] sm:$0xff] }
  0x18   :  { %67 = vmatpush.msra.mxu0 %v52_v10  ;;  %105 = vmatpush.msra.mxu1 %v92_v13  ;;  %v132_v37 = vld [vmem:[#allocation5 + $0x168] sm:$0xff]  ;;  %v130_v39 = vld [vmem:[#allocation5 + $0x158] sm:$0xff]  ;;  %v129_v40 = vld [vmem:[#allocation5 + $0x150] sm:$0xff] }
  0x19   :  { %139 = vmatpush.msra.mxu2 %v136_v33  ;;  %v128_v41 = vld [vmem:[#allocation5 + $0x148] sm:$0xff]  ;;  %v127_v42 = vld [vmem:[#allocation5 + $0x140] sm:$0xff]  ;;  %v126_v43 = vld [vmem:[#allocation5 + $0x138] sm:$0xff] }
  0x1a   :  { %68 = vmatpush.msra.mxu0 %v51_v12  ;;  %106 = vmatpush.msra.mxu1 %v91_v15  ;;  %v125_v44 = vld [vmem:[#allocation5 + $0x130] sm:$0xff]  ;;  %v124_v45 = vld [vmem:[#allocation5 + $0x128] sm:$0xff]  ;;  %v222_v46 = vld [vmem:[#allocation5 + $0x80] ss:$0 sm:$0xff] }
  0x1b   :  { %140 = vmatpush.msra.mxu2 %v135_v34  ;;  %v123_v50 = vld [vmem:[#allocation5 + $0x120] sm:$0xff]  ;;  %v122_v51 = vld [vmem:[#allocation5 + $0x118] sm:$0xff]  ;;  %v121_v52 = vld [vmem:[#allocation5 + $0x110] sm:$0xff] }
  0x1c   :  { %69 = vmatpush.msra.mxu0 %v50_v14  ;;  %107 = vmatpush.msra.mxu1 %v90_v17  ;;  %v175_v53 = vld [vmem:[#allocation5 + $0x210] sm:$0xff]  ;;  %v174_v54 = vld [vmem:[#allocation5 + $0x208] sm:$0xff]  ;;  %v173_v55 = vld [vmem:[#allocation5 + $0x200] sm:$0xff] }
  0x1d   :  { %141 = vmatpush.msra.mxu2 %v134_v35  ;;  %178 = vmatpush.msra.mxu3 %v175_v53  ;;  %v172_v56 = vld [vmem:[#allocation5 + $0x1f8] sm:$0xff]  ;;  %v171_v57 = vld [vmem:[#allocation5 + $0x1f0] sm:$0xff]  ;;  %v170_v58 = vld [vmem:[#allocation5 + $0x1e8] sm:$0xff] }
  0x1e   :  { %70 = vmatpush.msra.mxu0 %v49_v16  ;;  %108 = vmatpush.msra.mxu1 %v89_v19  ;;  %v169_v59 = vld [vmem:[#allocation5 + $0x1e0] sm:$0xff]  ;;  %v168_v60 = vld [vmem:[#allocation5 + $0x1d8] sm:$0xff]  ;;  %v167_v61 = vld [vmem:[#allocation5 + $0x1d0] sm:$0xff] }
  0x1f   :  { %142 = vmatpush.msra.mxu2 %v133_v36  ;;  %179 = vmatpush.msra.mxu3 %v174_v54  ;;  %v166_v62 = vld [vmem:[#allocation5 + $0x1c8] sm:$0xff]  ;;  %v165_v63 = vld [vmem:[#allocation5 + $0x1c0] sm:$0xff]  ;;  %v164_v0 = vld [vmem:[#allocation5 + $0x1b8] sm:$0xff] }
  0x20   :  { %71 = vmatpush.msra.mxu0 %v48_v18  ;;  %109 = vmatpush.msra.mxu1 %v88_v21  ;;  %v163_v1 = vld [vmem:[#allocation5 + $0x1b0] sm:$0xff]  ;;  %v223_v2 = vld [vmem:[#allocation5 + $0x108] ss:$0 sm:$0xff]  ;;  %v161_v7 = vld [vmem:[#allocation5 + $0x1a0] sm:$0xff] }
  0x21   :  { %143 = vmatpush.msra.mxu2 %v132_v37  ;;  %180 = vmatpush.msra.mxu3 %v173_v55  ;;  %v162_v6 = vld [vmem:[#allocation5 + $0x1a8] sm:$0xff]  ;;  %v160_v8 = vld [vmem:[#allocation5 + $0x198] sm:$0xff]  ;;  %v224_v9 = vld [vmem:[#allocation5 + $0x190] ss:$0 sm:$0xff] }
  0x22   :  { %72 = vmatpush.msra.mxu0 %v47_v20  ;;  %110 = vmatpush.msra.mxu1 %v87_v23  ;;  %v225_v13 = vld [vmem:[#allocation5 + $0x218] ss:$0 sm:$0xff] }
  0x23   :  { %144 = vmatpush.msra.mxu2 %v131_v38  ;;  %181 = vmatpush.msra.mxu3 %v172_v56 }
  0x24   :  { %73 = vmatpush.msra.mxu0 %v46_v22  ;;  %111 = vmatpush.msra.mxu1 %v86_v25 }
  0x25   :  { %145 = vmatpush.msra.mxu2 %v130_v39  ;;  %182 = vmatpush.msra.mxu3 %v171_v57 }
  0x26   :  { %74 = vmatpush.msra.mxu0 %v45_v24  ;;  %112 = vmatpush.msra.mxu1 %v85_v27 }
  0x27   :  { %146 = vmatpush.msra.mxu2 %v129_v40  ;;  %183 = vmatpush.msra.mxu3 %v170_v58 }
  0x28   :  { %75 = vmatpush.msra.mxu0 %v44_v26  ;;  %113 = vmatpush.msra.mxu1 %v84_v30 }
  0x29   :  { %147 = vmatpush.msra.mxu2 %v128_v41  ;;  %184 = vmatpush.msra.mxu3 %v169_v59 }
  0x2a   :  { %76 = vmatpush.msra.mxu0 %v43_v28  ;;  %114 = vmatpush.msra.mxu1 %v83_v31 }
  0x2b   :  { %77 = vmatmul.f32.vlgmr.msra.gmra.mxu0 %v42_v29  ;;  %148 = vmatpush.msra.mxu2 %v127_v42 }
  0x2c   :  { %115 = vmatpush.msra.mxu1 %v82_v32  ;;  %185 = vmatpush.msra.mxu3 %v168_v60 }
  0x2d   :  { %149 = vmatpush.msra.mxu2 %v126_v43 }
  0x2e   :  { %186 = vmatpush.msra.mxu3 %v167_v61 }
  0x2f   :  { %150 = vmatpush.msra.mxu2 %v125_v44 }
  0x30   :  { %187 = vmatpush.msra.mxu3 %v166_v62 }
  0x31   :  { %151 = vmatpush.msra.mxu2 %v124_v45 }
  0x32   :  { %188 = vmatpush.msra.mxu3 %v165_v63 }
  0x33   :  { %152 = vmatpush.msra.mxu2 %v123_v50 }
  0x34   :  { %189 = vmatpush.msra.mxu3 %v164_v0 }
  0x35   :  { %153 = vmatpush.msra.mxu2 %v122_v51 }
  0x36   :  { %190 = vmatpush.msra.mxu3 %v163_v1 }
  0x37   :  { %154 = vmatpush.msra.mxu2 %v121_v52 }
  0x38   :  { %191 = vmatpush.msra.mxu3 %v162_v6 }
  0x3a   :  { %192 = vmatpush.msra.mxu3 %v161_v7 }
  0x3c   :  { %193 = vmatpush.msra.mxu3 %v160_v8 }
  0xa8   :  { %v78_v47 = vpop.f32.mrf.mxu0 }
  0xa9   :  { %v79_v48 = vadd.f32 %v222_v46, %v78_v47 }
  0xab   :  { %v81_v49 = vmax.f32 %v79_v48, 0.0 }
  0xad   :  { %116 = vmatmul.f32.vlgmr.msra.gmra.mxu1 %v81_v49 }
 0x12a   :  { %v117_v3 = vpop.f32.mrf.mxu1 }
 0x12b   :  { %v118_v4 = vadd.f32 %v223_v2, %v117_v3 }
 0x12d   :  { %v120_v5 = vmax.f32 %v118_v4, 0.0 }
 0x12f   :  { %155 = vmatmul.f32.vlgmr.msra.gmra.mxu2 %v120_v5 }
 0x1b2   :  { %v156_v10 = vpop.f32.mrf.mxu2 }
 0x1b3   :  { %v157_v11 = vadd.f32 %v224_v9, %v156_v10 }
 0x1b5   :  { %v159_v12 = vmax.f32 %v157_v11, 0.0 }
 0x1b7   :  { %194 = vmatmul.f32.vlgmr.msra.gmra.mxu3 %v159_v12 }
 0x23a   :  { %v195_v14 = vpop.f32.mrf.mxu3 }
 0x23b   :  { %v196_v15 = vadd.f32 %v225_v13, %v195_v14 }
 0x23d   :  { %198 = vst [vmem:[#allocation7] sm:$0xff] %v196_v15 }
 0x23e   :  { %209 = dma.vmem_to_hbm [thread:$0]  %s205_s1, 128, %s207_s23, [#allocation4]  }
 0x23f   :  { %302 = dma.done.wait [#allocation4], 128  }
 0x240   :  { %303 = vsyncadd [#allocation4], 4294967168 }
 0x241   :  { %214 = vsyncpa [#allocation3], 1 }
 0x242   :  { %215 = vsyncpa [#allocation6], 1 }
 0x243   :  { %216 = vsyncpa [#allocation4], 1 }

</bundles_post_ra>
